<compile_context>
chip_gen: v5e
topology: v5e:2x2
jax: 0.10.0
libtpu: 0.0.40
codegen_flags: <defaults>
</compile_context>

<pallas_src>
import math

import jax
import jax.numpy as jnp
from jax.experimental import pallas as pl
from jax.experimental.pallas import tpu as pltpu

# ---- scaled-down hyper-parameters (bert-base would be H=768, L=12, NH=12, S=512) ----
B, S = 2, 8          # batch, sequence length
H = 32               # hidden size
NH, DH = 2, 16       # attention heads, head dim (NH * DH == H)
F = 4 * H            # FFN intermediate size
L = 2                # number of encoder layers
C = 4                # len(target_dict)  (number of classes)
CP = 128             # lane-padded class dim (dense [*,128] output store)
V = 128              # vocab size
EPS = 1e-12          # BERT LayerNorm eps


def _layernorm(x, g, b):
    mu = jnp.mean(x, axis=-1, keepdims=True)
    xc = x - mu
    var = jnp.mean(xc * xc, axis=-1, keepdims=True)
    return xc * jax.lax.rsqrt(var + EPS) * g + b


def _gelu(x):
    # TODO(synk): HF bert-base-cased uses exact (erf) GELU; tanh approximation used here.
    c = math.sqrt(2.0 / math.pi)
    return 0.5 * x * (1.0 + jnp.tanh(c * (x + 0.044715 * x * x * x)))


def _softmax_last(x):
    m = jnp.max(x, axis=-1, keepdims=True)
    e = jnp.exp(x - m)
    return e * pl.reciprocal(jnp.sum(e, axis=-1, keepdims=True), approx=True)


def term_classifier_kernel(
    x_ref,                      # [S, H]   summed embeddings for batch row b (pre-LN), f32
    mbias_ref,                  # [1, S]   additive key mask for batch row b, f32
    emb_g_ref, emb_b_ref,       # [1, H]   embedding LayerNorm
    wqkv_ref, bqkv_ref,         # [H, 3H] bf16, [1, 3H] f32   (layer l slice)
    wo_ref, bo_ref,             # [H, H]  bf16, [1, H]  f32
    ln1_g_ref, ln1_b_ref,       # [1, H]  f32
    w1_ref, b1_ref,             # [H, F]  bf16, [1, F]  f32
    w2_ref, b2_ref,             # [F, H]  bf16, [1, H]  f32
    ln2_g_ref, ln2_b_ref,       # [1, H]  f32
    wcls_ref, bcls_ref,         # [H, CP] f32, [1, CP] f32
    out_ref,                    # [1, CP]  lane-padded logits for batch row b
    x_sc,                       # VMEM scratch [S, H] f32 — activation carry across layers
):
    l = pl.program_id(1)
    scale = 1.0 / math.sqrt(DH)

    # ---- embedding LayerNorm: only on the first layer step of each batch row ----
    @pl.when(l == 0)
    def _():
        x_sc[...] = _layernorm(x_ref[...], emb_g_ref[...], emb_b_ref[...])

    x = x_sc[...]                                   # [S, H] f32
    mbias = mbias_ref[...]                          # [1, S] f32

    # ---------------- multi-head self-attention ----------------
    qkv = jnp.dot(x.astype(jnp.bfloat16), wqkv_ref[...],
                  preferred_element_type=jnp.float32) + bqkv_ref[...]   # [S, 3H] f32
    q = (qkv[:, 0 * H:1 * H] * scale).astype(jnp.bfloat16)   # fold 1/sqrt(DH) into Q
    k = qkv[:, 1 * H:2 * H].astype(jnp.bfloat16)
    v = qkv[:, 2 * H:3 * H].astype(jnp.bfloat16)

    ctx_heads = []
    for n in range(NH):                             # static unroll over heads
        hs = slice(n * DH, (n + 1) * DH)
        # scores = (q_h / sqrt(d)) @ k_h^T  (bf16 operands, f32 accumulate)
        s = jax.lax.dot_general(q[:, hs], k[:, hs], (((1,), (1,)), ((), ())),
                                preferred_element_type=jnp.float32)
        p = _softmax_last(s + mbias)                # [S, S] f32
        ctx_heads.append(jnp.dot(p.astype(jnp.bfloat16), v[:, hs],
                                 preferred_element_type=jnp.float32))   # [S, DH]
    ctx = jnp.concatenate(ctx_heads, axis=-1)       # [S, H] (lane-axis concat)

    attn = jnp.dot(ctx.astype(jnp.bfloat16), wo_ref[...],
                   preferred_element_type=jnp.float32) + bo_ref[...]
    x = _layernorm(x + attn, ln1_g_ref[...], ln1_b_ref[...])

    # ---------------- feed-forward network ----------------
    h = jnp.dot(x.astype(jnp.bfloat16), w1_ref[...],
                preferred_element_type=jnp.float32)
    h = _gelu(h + b1_ref[...])
    ffn = jnp.dot(h.astype(jnp.bfloat16), w2_ref[...],
                  preferred_element_type=jnp.float32) + b2_ref[...]
    x = _layernorm(x + ffn, ln2_g_ref[...], ln2_b_ref[...])

    # carry the residual stream to the next layer step (not needed after the last)
    @pl.when(l < L - 1)
    def _():
        x_sc[...] = x

    # ---- after the last layer: CLS row -> linear head (lane-padded logits) ----
    @pl.when(l == L - 1)
    def _():
        cls = x[0:1, :]                             # [1, H]  (sequence position 0)
        logits = jnp.dot(cls, wcls_ref[...],
                         preferred_element_type=jnp.float32) + bcls_ref[...]
        out_ref[...] = logits.astype(out_ref.dtype)


def init_params(key):
    ks = jax.random.split(key, 8)
    std = 0.02
    bf, f32 = jnp.bfloat16, jnp.float32
    wcls = jax.random.normal(ks[7], (H, C), f32) * std
    wcls = jnp.pad(wcls, ((0, 0), (0, CP - C)))     # zero-pad classes to lane width
    return {
        "word_emb": jax.random.normal(ks[0], (V, H), f32) * std,
        "pos_emb":  jax.random.normal(ks[1], (S, H), f32) * std,
        "type_emb": jax.random.normal(ks[2], (2, H), f32) * std,
        "emb_ln_g": jnp.ones((1, H), f32),
        "emb_ln_b": jnp.zeros((1, H), f32),
        # streamed per-layer MXU weights in bf16; biases / LayerNorm params in f32
        "wqkv": (jax.random.normal(ks[3], (L, H, 3 * H), f32) * std).astype(bf),
        "bqkv": jnp.zeros((L, 1, 3 * H), f32),
        "wo":   (jax.random.normal(ks[4], (L, H, H), f32) * std).astype(bf),
        "bo":   jnp.zeros((L, 1, H), f32),
        "ln1_g": jnp.ones((L, 1, H), f32),
        "ln1_b": jnp.zeros((L, 1, H), f32),
        "w1":   (jax.random.normal(ks[5], (L, H, F), f32) * std).astype(bf),
        "b1":   jnp.zeros((L, 1, F), f32),
        "w2":   (jax.random.normal(ks[6], (L, F, H), f32) * std).astype(bf),
        "b2":   jnp.zeros((L, 1, H), f32),
        "ln2_g": jnp.ones((L, 1, H), f32),
        "ln2_b": jnp.zeros((L, 1, H), f32),
        "wcls": wcls,                                # [H, CP]
        "bcls": jnp.zeros((1, CP), f32),
    }


@jax.jit
def term_classifier_forward(input_ids, attention_mask, params):
    # ---- plain-JAX glue: embedding gather + sum, mask bias (computed once) ----
    word = params["word_emb"][input_ids]                       # [B, S, H]
    pos = params["pos_emb"][None, :, :]                        # [1, S, H]
    typ = params["type_emb"][0][None, None, :]                 # token_type_ids == 0
    x = (word + pos + typ).astype(jnp.float32)                 # [B, S, H]
    mbias = ((1.0 - attention_mask.astype(jnp.float32)) * (-1e9))[:, None, :]  # [B,1,S]

    def lspec(shape):   # per-layer streamed block (leading L dim squeezed)
        return pl.BlockSpec((None,) + shape, lambda b, l: (l, 0, 0))

    def cspec(shape):   # constant (resident) block
        return pl.BlockSpec(shape, lambda b, l: (0,) * len(shape))

    in_specs = [
        pl.BlockSpec((None, S, H), lambda b, l: (b, 0, 0)),    # x (per batch row)
        pl.BlockSpec((None, 1, S), lambda b, l: (b, 0, 0)),    # mask bias
        cspec((1, H)), cspec((1, H)),                          # embedding LN
        lspec((H, 3 * H)), lspec((1, 3 * H)),                  # wqkv, bqkv
        lspec((H, H)), lspec((1, H)),                          # wo, bo
        lspec((1, H)), lspec((1, H)),                          # ln1 g/b
        lspec((H, F)), lspec((1, F)),                          # w1, b1
        lspec((F, H)), lspec((1, H)),                          # w2, b2
        lspec((1, H)), lspec((1, H)),                          # ln2 g/b
        cspec((H, CP)), cspec((1, CP)),                        # classifier head
    ]
    out_spec = pl.BlockSpec((None, 1, CP), lambda b, l: (b, 0, 0))

    out = pl.pallas_call(
        term_classifier_kernel,
        out_shape=jax.ShapeDtypeStruct((B, 1, CP), jnp.float32),
        grid_spec=pltpu.PrefetchScalarGridSpec(
            num_scalar_prefetch=0,
            grid=(B, L),                       # batch (parallel) x layers (arbitrary)
            in_specs=in_specs,
            out_specs=out_spec,
            scratch_shapes=[pltpu.VMEM((S, H), jnp.float32)],  # activation carry
        ),
        compiler_params=pltpu.CompilerParams(
            dimension_semantics=("parallel", "arbitrary"),
            vmem_limit_bytes=48 * 1024 * 1024,
        ),
    )(x, mbias,
      params["emb_ln_g"], params["emb_ln_b"],
      params["wqkv"], params["bqkv"], params["wo"], params["bo"],
      params["ln1_g"], params["ln1_b"],
      params["w1"], params["b1"], params["w2"], params["b2"],
      params["ln2_g"], params["ln2_b"],
      params["wcls"], params["bcls"])
    return out[:, 0, :C]                                       # [B, C] logits


def reference_forward(input_ids, attention_mask, params):
    """Pure-JAX reference mirroring the kernel's bf16 matmul / f32 elementwise math."""
    bf = jnp.bfloat16
    word = params["word_emb"][input_ids]
    pos = params["pos_emb"][None, :, :]
    typ = params["type_emb"][0][None, None, :]
    x = (word + pos + typ).astype(jnp.float32)                 # [B, S, H]
    mbias = ((1.0 - attention_mask.astype(jnp.float32)) * (-1e9))[:, None, :]

    x = _layernorm(x, params["emb_ln_g"], params["emb_ln_b"])
    scale = 1.0 / math.sqrt(DH)
    for l in range(L):
        qkv = jnp.einsum("bsh,hf->bsf", x.astype(bf), params["wqkv"][l],
                         preferred_element_type=jnp.float32) + params["bqkv"][l]
        q = (qkv[..., 0 * H:1 * H] * scale).astype(bf)
        k = qkv[..., 1 * H:2 * H].astype(bf)
        v = qkv[..., 2 * H:3 * H].astype(bf)
        heads = []
        for n in range(NH):
            hs = slice(n * DH, (n + 1) * DH)
            s = jnp.einsum("bqd,bkd->bqk", q[..., hs], k[..., hs],
                           preferred_element_type=jnp.float32) + mbias
            p = jax.nn.softmax(s, axis=-1)
            heads.append(jnp.einsum("bqk,bkd->bqd", p.astype(bf), v[..., hs],
                                    preferred_element_type=jnp.float32))
        ctx = jnp.concatenate(heads, axis=-1)
        attn = jnp.einsum("bsh,hf->bsf", ctx.astype(bf), params["wo"][l],
                          preferred_element_type=jnp.float32) + params["bo"][l]
        x = _layernorm(x + attn, params["ln1_g"][l], params["ln1_b"][l])
        h = jnp.einsum("bsh,hf->bsf", x.astype(bf), params["w1"][l],
                       preferred_element_type=jnp.float32)
        h = _gelu(h + params["b1"][l])
        ffn = jnp.einsum("bsh,hf->bsf", h.astype(bf), params["w2"][l],
                         preferred_element_type=jnp.float32) + params["b2"][l]
        x = _layernorm(x + ffn, params["ln2_g"][l], params["ln2_b"][l])
    cls = x[:, 0, :]                                           # [B, H]
    logits = cls @ params["wcls"] + params["bcls"]             # [B, CP]
    return logits[:, :C]


if __name__ == "__main__":
    key = jax.random.PRNGKey(0)
    pkey, ikey = jax.random.split(key)
    params = init_params(pkey)

    input_ids = jax.random.randint(ikey, (B, S), 0, V, dtype=jnp.int32)
    attention_mask = jnp.ones((B, S), jnp.int32).at[1, 6:].set(0)  # pad tail of batch 1

    logits = term_classifier_forward(input_ids, attention_mask, params)
    logits = jax.block_until_ready(logits)

    assert logits.shape == (B, C)
    assert bool(jnp.all(jnp.isfinite(logits)))

    # correctness vs pure-JAX reference (approx-reciprocal softmax -> loose tolerance)
    ref = jax.block_until_ready(reference_forward(input_ids, attention_mask, params))
    assert bool(jnp.allclose(logits, ref, rtol=5e-2, atol=5e-2))

    # equivalent of TermClassifier.predict
    pred = jax.block_until_ready(jnp.argmax(logits, axis=1))
    assert pred.shape == (B,)

    print("KERNEL_OK")
</pallas_src>

<mosaic_0001>
module attributes {stable_mosaic.version = 11 : i64} {
  func.func @term_classifier_kernel(%arg0: i32, %arg1: i32, %arg2: memref<1x8x32xf32, #tpu.memory_space<vmem>>, %arg3: memref<1x1x8xf32, #tpu.memory_space<vmem>>, %arg4: memref<1x32xf32, #tpu.memory_space<vmem>>, %arg5: memref<1x32xf32, #tpu.memory_space<vmem>>, %arg6: memref<1x32x96xbf16, #tpu.memory_space<vmem>>, %arg7: memref<1x1x96xf32, #tpu.memory_space<vmem>>, %arg8: memref<1x32x32xbf16, #tpu.memory_space<vmem>>, %arg9: memref<1x1x32xf32, #tpu.memory_space<vmem>>, %arg10: memref<1x1x32xf32, #tpu.memory_space<vmem>>, %arg11: memref<1x1x32xf32, #tpu.memory_space<vmem>>, %arg12: memref<1x32x128xbf16, #tpu.memory_space<vmem>>, %arg13: memref<1x1x128xf32, #tpu.memory_space<vmem>>, %arg14: memref<1x128x32xbf16, #tpu.memory_space<vmem>>, %arg15: memref<1x1x32xf32, #tpu.memory_space<vmem>>, %arg16: memref<1x1x32xf32, #tpu.memory_space<vmem>>, %arg17: memref<1x1x32xf32, #tpu.memory_space<vmem>>, %arg18: memref<32x128xf32, #tpu.memory_space<vmem>>, %arg19: memref<1x128xf32, #tpu.memory_space<vmem>>, %arg20: memref<1x1x128xf32, #tpu.memory_space<vmem>>, %arg21: memref<8x32xf32, #tpu.memory_space<vmem>>) attributes {dimension_semantics = [#tpu.dimension_semantics<parallel>, #tpu.dimension_semantics<arbitrary>], iteration_bounds = array<i64: 2, 2>, scalar_prefetch = 0 : i64, scratch_operands = 1 : i64, tpu.core_type = #tpu.core_type<tc>, window_params = [{transform_indices = @transform_0, window_bounds = array<i64: 1, 8, 32>}, {transform_indices = @transform_1, window_bounds = array<i64: 1, 1, 8>}, {pipeline_mode = #tpu.pipeline_mode<synchronous>, transform_indices = @transform_2, window_bounds = array<i64: 1, 32>}, {pipeline_mode = #tpu.pipeline_mode<synchronous>, transform_indices = @transform_3, window_bounds = array<i64: 1, 32>}, {transform_indices = @transform_4, window_bounds = array<i64: 1, 32, 96>}, {transform_indices = @transform_5, window_bounds = array<i64: 1, 1, 96>}, {transform_indices = @transform_6, window_bounds = array<i64: 1, 32, 32>}, {transform_indices = @transform_7, window_bounds = array<i64: 1, 1, 32>}, {transform_indices = @transform_8, window_bounds = array<i64: 1, 1, 32>}, {transform_indices = @transform_9, window_bounds = array<i64: 1, 1, 32>}, {transform_indices = @transform_10, window_bounds = array<i64: 1, 32, 128>}, {transform_indices = @transform_11, window_bounds = array<i64: 1, 1, 128>}, {transform_indices = @transform_12, window_bounds = array<i64: 1, 128, 32>}, {transform_indices = @transform_13, window_bounds = array<i64: 1, 1, 32>}, {transform_indices = @transform_14, window_bounds = array<i64: 1, 1, 32>}, {transform_indices = @transform_15, window_bounds = array<i64: 1, 1, 32>}, {pipeline_mode = #tpu.pipeline_mode<synchronous>, transform_indices = @transform_16, window_bounds = array<i64: 32, 128>}, {pipeline_mode = #tpu.pipeline_mode<synchronous>, transform_indices = @transform_17, window_bounds = array<i64: 1, 128>}, {transform_indices = @transform_18, window_bounds = array<i64: 1, 1, 128>}]} {
    %c0_i32 = arith.constant 0 : i32
    %0 = arith.cmpi eq, %arg1, %c0_i32 : i32
    %1 = arith.extui %0 : i1 to i32
    %c0_i32_0 = arith.constant 0 : i32
    %2 = arith.cmpi ne, %1, %c0_i32_0 : i32
    scf.if %2 {
      %c0_70 = arith.constant 0 : index
      %c0_71 = arith.constant 0 : index
      %c0_72 = arith.constant 0 : index
      %152 = vector.load %arg2[%c0_70, %c0_71, %c0_72] : memref<1x8x32xf32, #tpu.memory_space<vmem>>, vector<1x8x32xf32>
      %153 = vector.shape_cast %152 : vector<1x8x32xf32> to vector<8x32xf32>
      %c0_73 = arith.constant 0 : index
      %c0_74 = arith.constant 0 : index
      %154 = vector.load %arg4[%c0_73, %c0_74] : memref<1x32xf32, #tpu.memory_space<vmem>>, vector<1x32xf32>
      %c0_75 = arith.constant 0 : index
      %c0_76 = arith.constant 0 : index
      %155 = vector.load %arg5[%c0_75, %c0_76] : memref<1x32xf32, #tpu.memory_space<vmem>>, vector<1x32xf32>
      %cst_77 = arith.constant dense<0.000000e+00> : vector<8xf32>
      %156 = vector.multi_reduction <add>, %153, %cst_77 [1] : vector<8x32xf32> to vector<8xf32>
      %157 = vector.shape_cast %156 : vector<8xf32> to vector<8x1xf32>
      %cst_78 = arith.constant 3.200000e+01 : f32
      %158 = vector.broadcast %cst_78 : f32 to vector<8x1xf32>
      %159 = arith.divf %157, %158 : vector<8x1xf32>
      %160 = vector.broadcast %159 : vector<8x1xf32> to vector<8x32xf32>
      %161 = arith.subf %153, %160 : vector<8x32xf32>
      %162 = arith.mulf %161, %161 : vector<8x32xf32>
      %cst_79 = arith.constant dense<0.000000e+00> : vector<8xf32>
      %163 = vector.multi_reduction <add>, %162, %cst_79 [1] : vector<8x32xf32> to vector<8xf32>
      %164 = vector.shape_cast %163 : vector<8xf32> to vector<8x1xf32>
      %cst_80 = arith.constant 3.200000e+01 : f32
      %165 = vector.broadcast %cst_80 : f32 to vector<8x1xf32>
      %166 = arith.divf %164, %165 : vector<8x1xf32>
      %cst_81 = arith.constant 9.99999996E-13 : f32
      %167 = vector.broadcast %cst_81 : f32 to vector<8x1xf32>
      %168 = arith.addf %166, %167 : vector<8x1xf32>
      %169 = math.rsqrt %168 : vector<8x1xf32>
      %170 = vector.broadcast %169 : vector<8x1xf32> to vector<8x32xf32>
      %171 = arith.mulf %161, %170 : vector<8x32xf32>
      %172 = vector.broadcast %154 : vector<1x32xf32> to vector<8x32xf32>
      %173 = arith.mulf %171, %172 : vector<8x32xf32>
      %174 = vector.broadcast %155 : vector<1x32xf32> to vector<8x32xf32>
      %175 = arith.addf %173, %174 : vector<8x32xf32>
      %c0_82 = arith.constant 0 : index
      %c0_83 = arith.constant 0 : index
      %176 = vector.load %arg21[%c0_82, %c0_83] : memref<8x32xf32, #tpu.memory_space<vmem>>, vector<8x32xf32>
      tpu.vector_store %arg21[%c0_82, %c0_83], %175 {strides = array<i32>} : memref<8x32xf32, #tpu.memory_space<vmem>>, vector<8x32xf32>,
    } else {
    }
    %c0 = arith.constant 0 : index
    %c0_1 = arith.constant 0 : index
    %3 = vector.load %arg21[%c0, %c0_1] : memref<8x32xf32, #tpu.memory_space<vmem>>, vector<8x32xf32>
    %c0_2 = arith.constant 0 : index
    %c0_3 = arith.constant 0 : index
    %c0_4 = arith.constant 0 : index
    %4 = vector.load %arg3[%c0_2, %c0_3, %c0_4] : memref<1x1x8xf32, #tpu.memory_space<vmem>>, vector<1x1x8xf32>
    %5 = vector.shape_cast %4 : vector<1x1x8xf32> to vector<1x8xf32>
    %6 = arith.truncf %3 : vector<8x32xf32> to vector<8x32xbf16>
    %c0_5 = arith.constant 0 : index
    %c0_6 = arith.constant 0 : index
    %c0_7 = arith.constant 0 : index
    %7 = vector.load %arg6[%c0_5, %c0_6, %c0_7] : memref<1x32x96xbf16, #tpu.memory_space<vmem>>, vector<1x32x96xbf16>
    %8 = vector.shape_cast %7 : vector<1x32x96xbf16> to vector<32x96xbf16>
    %cst = arith.constant dense<0.000000e+00> : vector<8x96xf32>
    %9 = tpu.matmul %6, %8, %cst {dimension_numbers = #tpu.dot_dimension_numbers<[1], [0], [0], [1], [0, 0, 1, 1], [], []>} : vector<8x32xbf16>, vector<32x96xbf16>, vector<8x96xf32> -> vector<8x96xf32>
    %c0_8 = arith.constant 0 : index
    %c0_9 = arith.constant 0 : index
    %c0_10 = arith.constant 0 : index
    %10 = vector.load %arg7[%c0_8, %c0_9, %c0_10] : memref<1x1x96xf32, #tpu.memory_space<vmem>>, vector<1x1x96xf32>
    %11 = vector.shape_cast %10 : vector<1x1x96xf32> to vector<1x96xf32>
    %12 = vector.broadcast %11 : vector<1x96xf32> to vector<8x96xf32>
    %13 = arith.addf %9, %12 : vector<8x96xf32>
    %14 = vector.extract_strided_slice %13 {offsets = [0, 0], sizes = [8, 32], strides = [1, 1]} : vector<8x96xf32> to vector<8x32xf32>
    %cst_11 = arith.constant 2.500000e-01 : f32
    %15 = vector.broadcast %cst_11 : f32 to vector<8x32xf32>
    %16 = arith.mulf %14, %15 : vector<8x32xf32>
    %17 = arith.truncf %16 : vector<8x32xf32> to vector<8x32xbf16>
    %18 = vector.extract_strided_slice %13 {offsets = [0, 32], sizes = [8, 32], strides = [1, 1]} : vector<8x96xf32> to vector<8x32xf32>
    %19 = arith.truncf %18 : vector<8x32xf32> to vector<8x32xbf16>
    %20 = vector.extract_strided_slice %13 {offsets = [0, 64], sizes = [8, 32], strides = [1, 1]} : vector<8x96xf32> to vector<8x32xf32>
    %21 = arith.truncf %20 : vector<8x32xf32> to vector<8x32xbf16>
    %22 = vector.extract_strided_slice %17 {offsets = [0, 0], sizes = [8, 16], strides = [1, 1]} : vector<8x32xbf16> to vector<8x16xbf16>
    %23 = vector.extract_strided_slice %19 {offsets = [0, 0], sizes = [8, 16], strides = [1, 1]} : vector<8x32xbf16> to vector<8x16xbf16>
    %cst_12 = arith.constant dense<0.000000e+00> : vector<8x8xf32>
    %24 = tpu.matmul %22, %23, %cst_12 {dimension_numbers = #tpu.dot_dimension_numbers<[1], [1], [0], [0], [0, 0, 1, 0], [], []>} : vector<8x16xbf16>, vector<8x16xbf16>, vector<8x8xf32> -> vector<8x8xf32>
    %25 = vector.broadcast %5 : vector<1x8xf32> to vector<8x8xf32>
    %26 = arith.addf %24, %25 : vector<8x8xf32>
    %cst_13 = arith.constant dense<0xFF800000> : vector<8xf32>
    %27 = vector.multi_reduction <maximumf>, %26, %cst_13 [1] : vector<8x8xf32> to vector<8xf32>
    %28 = vector.shape_cast %27 : vector<8xf32> to vector<8x1xf32>
    %29 = vector.broadcast %28 : vector<8x1xf32> to vector<8x8xf32>
    %30 = arith.subf %26, %29 : vector<8x8xf32>
    %31 = math.exp %30 : vector<8x8xf32>
    %cst_14 = arith.constant dense<0.000000e+00> : vector<8xf32>
    %32 = vector.multi_reduction <add>, %31, %cst_14 [1] : vector<8x8xf32> to vector<8xf32>
    %33 = vector.shape_cast %32 : vector<8xf32> to vector<8x1xf32>
    %34 = tpu.reciprocal %33 {approx = true} : vector<8x1xf32> -> vector<8x1xf32>
    %35 = vector.broadcast %34 : vector<8x1xf32> to vector<8x8xf32>
    %36 = arith.mulf %31, %35 : vector<8x8xf32>
    %37 = arith.truncf %36 : vector<8x8xf32> to vector<8x8xbf16>
    %38 = vector.extract_strided_slice %21 {offsets = [0, 0], sizes = [8, 16], strides = [1, 1]} : vector<8x32xbf16> to vector<8x16xbf16>
    %cst_15 = arith.constant dense<0.000000e+00> : vector<8x16xf32>
    %39 = tpu.matmul %37, %38, %cst_15 {dimension_numbers = #tpu.dot_dimension_numbers<[1], [0], [0], [1], [0, 0, 1, 1], [], []>} : vector<8x8xbf16>, vector<8x16xbf16>, vector<8x16xf32> -> vector<8x16xf32>
    %40 = vector.extract_strided_slice %17 {offsets = [0, 16], sizes = [8, 16], strides = [1, 1]} : vector<8x32xbf16> to vector<8x16xbf16>
    %41 = vector.extract_strided_slice %19 {offsets = [0, 16], sizes = [8, 16], strides = [1, 1]} : vector<8x32xbf16> to vector<8x16xbf16>
    %cst_16 = arith.constant dense<0.000000e+00> : vector<8x8xf32>
    %42 = tpu.matmul %40, %41, %cst_16 {dimension_numbers = #tpu.dot_dimension_numbers<[1], [1], [0], [0], [0, 0, 1, 0], [], []>} : vector<8x16xbf16>, vector<8x16xbf16>, vector<8x8xf32> -> vector<8x8xf32>
    %43 = vector.broadcast %5 : vector<1x8xf32> to vector<8x8xf32>
    %44 = arith.addf %42, %43 : vector<8x8xf32>
    %cst_17 = arith.constant dense<0xFF800000> : vector<8xf32>
    %45 = vector.multi_reduction <maximumf>, %44, %cst_17 [1] : vector<8x8xf32> to vector<8xf32>
    %46 = vector.shape_cast %45 : vector<8xf32> to vector<8x1xf32>
    %47 = vector.broadcast %46 : vector<8x1xf32> to vector<8x8xf32>
    %48 = arith.subf %44, %47 : vector<8x8xf32>
    %49 = math.exp %48 : vector<8x8xf32>
    %cst_18 = arith.constant dense<0.000000e+00> : vector<8xf32>
    %50 = vector.multi_reduction <add>, %49, %cst_18 [1] : vector<8x8xf32> to vector<8xf32>
    %51 = vector.shape_cast %50 : vector<8xf32> to vector<8x1xf32>
    %52 = tpu.reciprocal %51 {approx = true} : vector<8x1xf32> -> vector<8x1xf32>
    %53 = vector.broadcast %52 : vector<8x1xf32> to vector<8x8xf32>
    %54 = arith.mulf %49, %53 : vector<8x8xf32>
    %55 = arith.truncf %54 : vector<8x8xf32> to vector<8x8xbf16>
    %56 = vector.extract_strided_slice %21 {offsets = [0, 16], sizes = [8, 16], strides = [1, 1]} : vector<8x32xbf16> to vector<8x16xbf16>
    %cst_19 = arith.constant dense<0.000000e+00> : vector<8x16xf32>
    %57 = tpu.matmul %55, %56, %cst_19 {dimension_numbers = #tpu.dot_dimension_numbers<[1], [0], [0], [1], [0, 0, 1, 1], [], []>} : vector<8x8xbf16>, vector<8x16xbf16>, vector<8x16xf32> -> vector<8x16xf32>
    %58 = tpu.concatenate %39, %57 in 1 : vector<8x16xf32>, vector<8x16xf32> -> vector<8x32xf32>
    %59 = arith.truncf %58 : vector<8x32xf32> to vector<8x32xbf16>
    %c0_20 = arith.constant 0 : index
    %c0_21 = arith.constant 0 : index
    %c0_22 = arith.constant 0 : index
    %60 = vector.load %arg8[%c0_20, %c0_21, %c0_22] : memref<1x32x32xbf16, #tpu.memory_space<vmem>>, vector<1x32x32xbf16>
    %61 = vector.shape_cast %60 : vector<1x32x32xbf16> to vector<32x32xbf16>
    %cst_23 = arith.constant dense<0.000000e+00> : vector<8x32xf32>
    %62 = tpu.matmul %59, %61, %cst_23 {dimension_numbers = #tpu.dot_dimension_numbers<[1], [0], [0], [1], [0, 0, 1, 1], [], []>} : vector<8x32xbf16>, vector<32x32xbf16>, vector<8x32xf32> -> vector<8x32xf32>
    %c0_24 = arith.constant 0 : index
    %c0_25 = arith.constant 0 : index
    %c0_26 = arith.constant 0 : index
    %63 = vector.load %arg9[%c0_24, %c0_25, %c0_26] : memref<1x1x32xf32, #tpu.memory_space<vmem>>, vector<1x1x32xf32>
    %64 = vector.shape_cast %63 : vector<1x1x32xf32> to vector<1x32xf32>
    %65 = vector.broadcast %64 : vector<1x32xf32> to vector<8x32xf32>
    %66 = arith.addf %62, %65 : vector<8x32xf32>
    %67 = arith.addf %3, %66 : vector<8x32xf32>
    %c0_27 = arith.constant 0 : index
    %c0_28 = arith.constant 0 : index
    %c0_29 = arith.constant 0 : index
    %68 = vector.load %arg10[%c0_27, %c0_28, %c0_29] : memref<1x1x32xf32, #tpu.memory_space<vmem>>, vector<1x1x32xf32>
    %69 = vector.shape_cast %68 : vector<1x1x32xf32> to vector<1x32xf32>
    %c0_30 = arith.constant 0 : index
    %c0_31 = arith.constant 0 : index
    %c0_32 = arith.constant 0 : index
    %70 = vector.load %arg11[%c0_30, %c0_31, %c0_32] : memref<1x1x32xf32, #tpu.memory_space<vmem>>, vector<1x1x32xf32>
    %71 = vector.shape_cast %70 : vector<1x1x32xf32> to vector<1x32xf32>
    %cst_33 = arith.constant dense<0.000000e+00> : vector<8xf32>
    %72 = vector.multi_reduction <add>, %67, %cst_33 [1] : vector<8x32xf32> to vector<8xf32>
    %73 = vector.shape_cast %72 : vector<8xf32> to vector<8x1xf32>
    %cst_34 = arith.constant 3.200000e+01 : f32
    %74 = vector.broadcast %cst_34 : f32 to vector<8x1xf32>
    %75 = arith.divf %73, %74 : vector<8x1xf32>
    %76 = vector.broadcast %75 : vector<8x1xf32> to vector<8x32xf32>
    %77 = arith.subf %67, %76 : vector<8x32xf32>
    %78 = arith.mulf %77, %77 : vector<8x32xf32>
    %cst_35 = arith.constant dense<0.000000e+00> : vector<8xf32>
    %79 = vector.multi_reduction <add>, %78, %cst_35 [1] : vector<8x32xf32> to vector<8xf32>
    %80 = vector.shape_cast %79 : vector<8xf32> to vector<8x1xf32>
    %cst_36 = arith.constant 3.200000e+01 : f32
    %81 = vector.broadcast %cst_36 : f32 to vector<8x1xf32>
    %82 = arith.divf %80, %81 : vector<8x1xf32>
    %cst_37 = arith.constant 9.99999996E-13 : f32
    %83 = vector.broadcast %cst_37 : f32 to vector<8x1xf32>
    %84 = arith.addf %82, %83 : vector<8x1xf32>
    %85 = math.rsqrt %84 : vector<8x1xf32>
    %86 = vector.broadcast %85 : vector<8x1xf32> to vector<8x32xf32>
    %87 = arith.mulf %77, %86 : vector<8x32xf32>
    %88 = vector.broadcast %69 : vector<1x32xf32> to vector<8x32xf32>
    %89 = arith.mulf %87, %88 : vector<8x32xf32>
    %90 = vector.broadcast %71 : vector<1x32xf32> to vector<8x32xf32>
    %91 = arith.addf %89, %90 : vector<8x32xf32>
    %92 = arith.truncf %91 : vector<8x32xf32> to vector<8x32xbf16>
    %c0_38 = arith.constant 0 : index
    %c0_39 = arith.constant 0 : index
    %c0_40 = arith.constant 0 : index
    %93 = vector.load %arg12[%c0_38, %c0_39, %c0_40] : memref<1x32x128xbf16, #tpu.memory_space<vmem>>, vector<1x32x128xbf16>
    %94 = vector.shape_cast %93 : vector<1x32x128xbf16> to vector<32x128xbf16>
    %cst_41 = arith.constant dense<0.000000e+00> : vector<8x128xf32>
    %95 = tpu.matmul %92, %94, %cst_41 {dimension_numbers = #tpu.dot_dimension_numbers<[1], [0], [0], [1], [0, 0, 1, 1], [], []>} : vector<8x32xbf16>, vector<32x128xbf16>, vector<8x128xf32> -> vector<8x128xf32>
    %c0_42 = arith.constant 0 : index
    %c0_43 = arith.constant 0 : index
    %c0_44 = arith.constant 0 : index
    %96 = vector.load %arg13[%c0_42, %c0_43, %c0_44] : memref<1x1x128xf32, #tpu.memory_space<vmem>>, vector<1x1x128xf32>
    %97 = vector.shape_cast %96 : vector<1x1x128xf32> to vector<1x128xf32>
    %98 = vector.broadcast %97 : vector<1x128xf32> to vector<8x128xf32>
    %99 = arith.addf %95, %98 : vector<8x128xf32>
    %cst_45 = arith.constant 5.000000e-01 : f32
    %100 = vector.broadcast %cst_45 : f32 to vector<8x128xf32>
    %101 = arith.mulf %100, %99 : vector<8x128xf32>
    %cst_46 = arith.constant 4.471500e-02 : f32
    %102 = vector.broadcast %cst_46 : f32 to vector<8x128xf32>
    %103 = arith.mulf %102, %99 : vector<8x128xf32>
    %104 = arith.mulf %103, %99 : vector<8x128xf32>
    %105 = arith.mulf %104, %99 : vector<8x128xf32>
    %106 = arith.addf %99, %105 : vector<8x128xf32>
    %cst_47 = arith.constant 0.797884583 : f32
    %107 = vector.broadcast %cst_47 : f32 to vector<8x128xf32>
    %108 = arith.mulf %107, %106 : vector<8x128xf32>
    %109 = math.tanh %108 : vector<8x128xf32>
    %cst_48 = arith.constant 1.000000e+00 : f32
    %110 = vector.broadcast %cst_48 : f32 to vector<8x128xf32>
    %111 = arith.addf %110, %109 : vector<8x128xf32>
    %112 = arith.mulf %101, %111 : vector<8x128xf32>
    %113 = arith.truncf %112 : vector<8x128xf32> to vector<8x128xbf16>
    %c0_49 = arith.constant 0 : index
    %c0_50 = arith.constant 0 : index
    %c0_51 = arith.constant 0 : index
    %114 = vector.load %arg14[%c0_49, %c0_50, %c0_51] : memref<1x128x32xbf16, #tpu.memory_space<vmem>>, vector<1x128x32xbf16>
    %115 = vector.shape_cast %114 : vector<1x128x32xbf16> to vector<128x32xbf16>
    %cst_52 = arith.constant dense<0.000000e+00> : vector<8x32xf32>
    %116 = tpu.matmul %113, %115, %cst_52 {dimension_numbers = #tpu.dot_dimension_numbers<[1], [0], [0], [1], [0, 0, 1, 1], [], []>} : vector<8x128xbf16>, vector<128x32xbf16>, vector<8x32xf32> -> vector<8x32xf32>
    %c0_53 = arith.constant 0 : index
    %c0_54 = arith.constant 0 : index
    %c0_55 = arith.constant 0 : index
    %117 = vector.load %arg15[%c0_53, %c0_54, %c0_55] : memref<1x1x32xf32, #tpu.memory_space<vmem>>, vector<1x1x32xf32>
    %118 = vector.shape_cast %117 : vector<1x1x32xf32> to vector<1x32xf32>
    %119 = vector.broadcast %118 : vector<1x32xf32> to vector<8x32xf32>
    %120 = arith.addf %116, %119 : vector<8x32xf32>
    %121 = arith.addf %91, %120 : vector<8x32xf32>
    %c0_56 = arith.constant 0 : index
    %c0_57 = arith.constant 0 : index
    %c0_58 = arith.constant 0 : index
    %122 = vector.load %arg16[%c0_56, %c0_57, %c0_58] : memref<1x1x32xf32, #tpu.memory_space<vmem>>, vector<1x1x32xf32>
    %123 = vector.shape_cast %122 : vector<1x1x32xf32> to vector<1x32xf32>
    %c0_59 = arith.constant 0 : index
    %c0_60 = arith.constant 0 : index
    %c0_61 = arith.constant 0 : index
    %124 = vector.load %arg17[%c0_59, %c0_60, %c0_61] : memref<1x1x32xf32, #tpu.memory_space<vmem>>, vector<1x1x32xf32>
    %125 = vector.shape_cast %124 : vector<1x1x32xf32> to vector<1x32xf32>
    %cst_62 = arith.constant dense<0.000000e+00> : vector<8xf32>
    %126 = vector.multi_reduction <add>, %121, %cst_62 [1] : vector<8x32xf32> to vector<8xf32>
    %127 = vector.shape_cast %126 : vector<8xf32> to vector<8x1xf32>
    %cst_63 = arith.constant 3.200000e+01 : f32
    %128 = vector.broadcast %cst_63 : f32 to vector<8x1xf32>
    %129 = arith.divf %127, %128 : vector<8x1xf32>
    %130 = vector.broadcast %129 : vector<8x1xf32> to vector<8x32xf32>
    %131 = arith.subf %121, %130 : vector<8x32xf32>
    %132 = arith.mulf %131, %131 : vector<8x32xf32>
    %cst_64 = arith.constant dense<0.000000e+00> : vector<8xf32>
    %133 = vector.multi_reduction <add>, %132, %cst_64 [1] : vector<8x32xf32> to vector<8xf32>
    %134 = vector.shape_cast %133 : vector<8xf32> to vector<8x1xf32>
    %cst_65 = arith.constant 3.200000e+01 : f32
    %135 = vector.broadcast %cst_65 : f32 to vector<8x1xf32>
    %136 = arith.divf %134, %135 : vector<8x1xf32>
    %cst_66 = arith.constant 9.99999996E-13 : f32
    %137 = vector.broadcast %cst_66 : f32 to vector<8x1xf32>
    %138 = arith.addf %136, %137 : vector<8x1xf32>
    %139 = math.rsqrt %138 : vector<8x1xf32>
    %140 = vector.broadcast %139 : vector<8x1xf32> to vector<8x32xf32>
    %141 = arith.mulf %131, %140 : vector<8x32xf32>
    %142 = vector.broadcast %123 : vector<1x32xf32> to vector<8x32xf32>
    %143 = arith.mulf %141, %142 : vector<8x32xf32>
    %144 = vector.broadcast %125 : vector<1x32xf32> to vector<8x32xf32>
    %145 = arith.addf %143, %144 : vector<8x32xf32>
    %c1_i32 = arith.constant 1 : i32
    %146 = arith.cmpi slt, %arg1, %c1_i32 : i32
    %147 = arith.extui %146 : i1 to i32
    %c0_i32_67 = arith.constant 0 : i32
    %148 = arith.cmpi ne, %147, %c0_i32_67 : i32
    scf.if %148 {
      %c0_70 = arith.constant 0 : index
      %c0_71 = arith.constant 0 : index
      %152 = vector.load %arg21[%c0_70, %c0_71] : memref<8x32xf32, #tpu.memory_space<vmem>>, vector<8x32xf32>
      tpu.vector_store %arg21[%c0_70, %c0_71], %145 {strides = array<i32>} : memref<8x32xf32, #tpu.memory_space<vmem>>, vector<8x32xf32>,
    } else {
    }
    %c1_i32_68 = arith.constant 1 : i32
    %149 = arith.cmpi eq, %arg1, %c1_i32_68 : i32
    %150 = arith.extui %149 : i1 to i32
    %c0_i32_69 = arith.constant 0 : i32
    %151 = arith.cmpi ne, %150, %c0_i32_69 : i32
    scf.if %151 {
      %152 = vector.extract_strided_slice %145 {offsets = [0, 0], sizes = [1, 32], strides = [1, 1]} : vector<8x32xf32> to vector<1x32xf32>
      %c0_70 = arith.constant 0 : index
      %c0_71 = arith.constant 0 : index
      %153 = vector.load %arg18[%c0_70, %c0_71] : memref<32x128xf32, #tpu.memory_space<vmem>>, vector<32x128xf32>
      %cst_72 = arith.constant dense<0.000000e+00> : vector<1x128xf32>
      %154 = tpu.matmul %152, %153, %cst_72 {dimension_numbers = #tpu.dot_dimension_numbers<[1], [0], [0], [1], [0, 0, 1, 1], [], []>} : vector<1x32xf32>, vector<32x128xf32>, vector<1x128xf32> -> vector<1x128xf32>
      %c0_73 = arith.constant 0 : index
      %c0_74 = arith.constant 0 : index
      %155 = vector.load %arg19[%c0_73, %c0_74] : memref<1x128xf32, #tpu.memory_space<vmem>>, vector<1x128xf32>
      %156 = arith.addf %154, %155 : vector<1x128xf32>
      %c0_75 = arith.constant 0 : index
      %c0_76 = arith.constant 0 : index
      %c0_77 = arith.constant 0 : index
      %157 = vector.load %arg20[%c0_75, %c0_76, %c0_77] : memref<1x1x128xf32, #tpu.memory_space<vmem>>, vector<1x1x128xf32>
      %158 = vector.shape_cast %157 : vector<1x1x128xf32> to vector<1x128xf32>
      %159 = vector.shape_cast %156 : vector<1x128xf32> to vector<1x1x128xf32>
      tpu.vector_store %arg20[%c0_75, %c0_76, %c0_77], %159 {strides = array<i32>} : memref<1x1x128xf32, #tpu.memory_space<vmem>>, vector<1x1x128xf32>,
    } else {
    }
    return
  }
  func.func @transform_0(%arg0: i32, %arg1: i32) -> (i32, i32, i32) {
    %c0_i32 = arith.constant 0 : i32
    %c0_i32_0 = arith.constant 0 : i32
    %c0_i32_1 = arith.constant 0 : i32
    return %arg0, %c0_i32, %c0_i32_0 : i32, i32, i32
  }
  func.func @transform_1(%arg0: i32, %arg1: i32) -> (i32, i32, i32) {
    %c0_i32 = arith.constant 0 : i32
    %c0_i32_0 = arith.constant 0 : i32
    %c0_i32_1 = arith.constant 0 : i32
    return %arg0, %c0_i32, %c0_i32_0 : i32, i32, i32
  }
  func.func @transform_2(%arg0: i32, %arg1: i32) -> (i32, i32) {
    %c0_i32 = arith.constant 0 : i32
    %c0_i32_0 = arith.constant 0 : i32
    %c0_i32_1 = arith.constant 0 : i32
    return %c0_i32, %c0_i32_0 : i32, i32
  }
  func.func @transform_3(%arg0: i32, %arg1: i32) -> (i32, i32) {
    %c0_i32 = arith.constant 0 : i32
    %c0_i32_0 = arith.constant 0 : i32
    %c0_i32_1 = arith.constant 0 : i32
    return %c0_i32, %c0_i32_0 : i32, i32
  }
  func.func @transform_4(%arg0: i32, %arg1: i32) -> (i32, i32, i32) {
    %c0_i32 = arith.constant 0 : i32
    %c0_i32_0 = arith.constant 0 : i32
    %c0_i32_1 = arith.constant 0 : i32
    return %arg1, %c0_i32, %c0_i32_0 : i32, i32, i32
  }
  func.func @transform_5(%arg0: i32, %arg1: i32) -> (i32, i32, i32) {
    %c0_i32 = arith.constant 0 : i32
    %c0_i32_0 = arith.constant 0 : i32
    %c0_i32_1 = arith.constant 0 : i32
    return %arg1, %c0_i32, %c0_i32_0 : i32, i32, i32
  }
  func.func @transform_6(%arg0: i32, %arg1: i32) -> (i32, i32, i32) {
    %c0_i32 = arith.constant 0 : i32
    %c0_i32_0 = arith.constant 0 : i32
    %c0_i32_1 = arith.constant 0 : i32
    return %arg1, %c0_i32, %c0_i32_0 : i32, i32, i32
  }
  func.func @transform_7(%arg0: i32, %arg1: i32) -> (i32, i32, i32) {
    %c0_i32 = arith.constant 0 : i32
    %c0_i32_0 = arith.constant 0 : i32
    %c0_i32_1 = arith.constant 0 : i32
    return %arg1, %c0_i32, %c0_i32_0 : i32, i32, i32
  }
  func.func @transform_8(%arg0: i32, %arg1: i32) -> (i32, i32, i32) {
    %c0_i32 = arith.constant 0 : i32
    %c0_i32_0 = arith.constant 0 : i32
    %c0_i32_1 = arith.constant 0 : i32
    return %arg1, %c0_i32, %c0_i32_0 : i32, i32, i32
  }
  func.func @transform_9(%arg0: i32, %arg1: i32) -> (i32, i32, i32) {
    %c0_i32 = arith.constant 0 : i32
    %c0_i32_0 = arith.constant 0 : i32
    %c0_i32_1 = arith.constant 0 : i32
    return %arg1, %c0_i32, %c0_i32_0 : i32, i32, i32
  }
  func.func @transform_10(%arg0: i32, %arg1: i32) -> (i32, i32, i32) {
    %c0_i32 = arith.constant 0 : i32
    %c0_i32_0 = arith.constant 0 : i32
    %c0_i32_1 = arith.constant 0 : i32
    return %arg1, %c0_i32, %c0_i32_0 : i32, i32, i32
  }
  func.func @transform_11(%arg0: i32, %arg1: i32) -> (i32, i32, i32) {
    %c0_i32 = arith.constant 0 : i32
    %c0_i32_0 = arith.constant 0 : i32
    %c0_i32_1 = arith.constant 0 : i32
    return %arg1, %c0_i32, %c0_i32_0 : i32, i32, i32
  }
  func.func @transform_12(%arg0: i32, %arg1: i32) -> (i32, i32, i32) {
    %c0_i32 = arith.constant 0 : i32
    %c0_i32_0 = arith.constant 0 : i32
    %c0_i32_1 = arith.constant 0 : i32
    return %arg1, %c0_i32, %c0_i32_0 : i32, i32, i32
  }
  func.func @transform_13(%arg0: i32, %arg1: i32) -> (i32, i32, i32) {
    %c0_i32 = arith.constant 0 : i32
    %c0_i32_0 = arith.constant 0 : i32
    %c0_i32_1 = arith.constant 0 : i32
    return %arg1, %c0_i32, %c0_i32_0 : i32, i32, i32
  }
  func.func @transform_14(%arg0: i32, %arg1: i32) -> (i32, i32, i32) {
    %c0_i32 = arith.constant 0 : i32
    %c0_i32_0 = arith.constant 0 : i32
    %c0_i32_1 = arith.constant 0 : i32
    return %arg1, %c0_i32, %c0_i32_0 : i32, i32, i32
  }
  func.func @transform_15(%arg0: i32, %arg1: i32) -> (i32, i32, i32) {
    %c0_i32 = arith.constant 0 : i32
    %c0_i32_0 = arith.constant 0 : i32
    %c0_i32_1 = arith.constant 0 : i32
    return %arg1, %c0_i32, %c0_i32_0 : i32, i32, i32
  }
  func.func @transform_16(%arg0: i32, %arg1: i32) -> (i32, i32) {
    %c0_i32 = arith.constant 0 : i32
    %c0_i32_0 = arith.constant 0 : i32
    %c0_i32_1 = arith.constant 0 : i32
    return %c0_i32, %c0_i32_0 : i32, i32
  }
  func.func @transform_17(%arg0: i32, %arg1: i32) -> (i32, i32) {
    %c0_i32 = arith.constant 0 : i32
    %c0_i32_0 = arith.constant 0 : i32
    %c0_i32_1 = arith.constant 0 : i32
    return %c0_i32, %c0_i32_0 : i32, i32
  }
  func.func @transform_18(%arg0: i32, %arg1: i32) -> (i32, i32, i32) {
    %c0_i32 = arith.constant 0 : i32
    %c0_i32_0 = arith.constant 0 : i32
    %c0_i32_1 = arith.constant 0 : i32
    return %arg0, %c0_i32, %c0_i32_0 : i32, i32, i32
  }
}

</mosaic_0001>

<bundles_post_ra>
// kernel: term_classifier_forward.1
= control target key start
LH: loop header
LB: loop body
LE: loop exit
PB: predicated region body
PF: predicated region fallthrough
CT: control target
= control target key end

     0   :  { %s2206_s0 = inlined_call_operand.vmem [shape: f32[2,8,32], index: 0, kind: input, shape index: {}]   ;;  %s2207_s1 = inlined_call_operand.vmem [shape: f32[2,1,8], index: 1, kind: input, shape index: {}]   ;;  %s2208_s2 = inlined_call_operand.vmem [shape: f32[1,32], index: 2, kind: input, shape index: {}]   ;;  %s2209_s3 = inlined_call_operand.vmem [shape: f32[1,32], index: 3, kind: input, shape index: {}]   ;;  %s2210_s4 = inlined_call_operand.vmem [shape: bf16[2,32,96], index: 4, kind: input, shape index: {}]   ;;  %s2211_s5 = inlined_call_operand.vmem [shape: f32[2,1,96], index: 5, kind: input, shape index: {}]   ;;  %s2212_s6 = inlined_call_operand.vmem [shape: bf16[2,32,32], index: 6, kind: input, shape index: {}]   ;;  %s2213_s7 = inlined_call_operand.vmem [shape: f32[2,1,32], index: 7, kind: input, shape index: {}]   ;;  %s2214_s8 = inlined_call_operand.vmem [shape: f32[2,1,32], index: 8, kind: input, shape index: {}]   ;;  %s2215_s9 = inlined_call_operand.vmem [shape: f32[2,1,32], index: 9, kind: input, shape index: {}]   ;;  %s2216_s10 = inlined_call_operand.vmem [shape: bf16[2,32,128], index: 10, kind: input, shape index: {}]   ;;  %s2217_s11 = inlined_call_operand.vmem [shape: f32[2,1,128], index: 11, kind: input, shape index: {}]   ;;  %s2218_s12 = inlined_call_operand.vmem [shape: bf16[2,128,32], index: 12, kind: input, shape index: {}]   ;;  %s2219_s13 = inlined_call_operand.vmem [shape: f32[2,1,32], index: 13, kind: input, shape index: {}]   ;;  %s2220_s14 = inlined_call_operand.vmem [shape: f32[2,1,32], index: 14, kind: input, shape index: {}]   ;;  %s2221_s15 = inlined_call_operand.vmem [shape: f32[2,1,32], index: 15, kind: input, shape index: {}]   ;;  %s2222_s16 = inlined_call_operand.vmem [shape: f32[32,128], index: 16, kind: input, shape index: {}]   ;;  %s2223_s17 = inlined_call_operand.vmem [shape: f32[1,128], index: 17, kind: input, shape index: {}]   ;;  %s2224_s18 = inlined_call_operand.hbm [shape: f32[2,1,128], index: 18, kind: output, shape index: {}]  }
   0x1   :  { %2239 = sst [smem:[#allocation18_spill]] %s2206_s0 }
   0x2   :  { %2240 = sst [smem:[#allocation19_spill]] %s2207_s1 }
   0x3   :  { %2241 = sst [smem:[#allocation20_spill]] %s2208_s2 }
   0x4   :  { %2242 = sst [smem:[#allocation21_spill]] %s2209_s3 }
   0x5   :  { %2243 = sst [smem:[#allocation22_spill]] %s2210_s4 }
   0x6   :  { %2244 = sst [smem:[#allocation23_spill]] %s2212_s6 }
   0x7   :  { %2245 = sst [smem:[#allocation24_spill]] %s2215_s9 }
   0x8   :  { %2246 = sst [smem:[#allocation25_spill]] %s2216_s10 }
   0x9   :  { %2247 = sst [smem:[#allocation26_spill]] %s2220_s14 }
   0xa   :  { %2248 = sst [smem:[#allocation27_spill]] %s2221_s15 }
   0xb   :  { %2249 = sst [smem:[#allocation28_spill]] %s2222_s16 }
   0xc   :  { %2250 = sst [smem:[#allocation29_spill]] %s2223_s17 }
   0xd   :  { %2251 = sst [smem:[#allocation30_spill]] %s2224_s18 }
   0xe   :  { %23 = vsyncpa [#allocation4], 0 }
   0xf   :  { %25 = vsyncpa [#allocation4 + $0x1], 0  ;;  %s1899_s27 = smov 0   ;;  %s1901_s28 = smov 0  }
  0x10   :  { %s1903_s29 = smov 0   ;;  %s1905_s30 = smov 0  }
  0x11   :  { %s1907_s0 = smov 0   ;;  %s1909_s19 = smov 0  }
  0x12   :  { %s1911_s1 = smov 0   ;;  %s1913_s20 = smov 0  }
  0x13 LB: > { %2252 = sst [smem:[#allocation6_spill]] %s1766_s27  ;;  %s1489_s21 = sadd.s32 4294967295, %s1794_s20   ;;  %s1794_s20 = sphi %s1913_s20, %s31_s20   ;;  %s1790_s1 = sphi %s1911_s1, %s2305_s1   ;;  %s1786_s19 = sphi %s1909_s19, %s2304_s19   ;;  %s1782_s0 = sphi %s1907_s0, %s2303_s0   ;;  %s1778_s30 = sphi %s1905_s30, %s2302_s30   ;;  %s1774_s29 = sphi %s1903_s29, %s2301_s29   ;;  %s1770_s28 = sphi %s1901_s28, %s2307_s28   ;;  %s1766_s27 = sphi %s1899_s27, %s2306_s27  }
  0x14   : > { %2253 = sst [smem:[#allocation7_spill]] %s1774_s29  ;;  %s1490_s22 = sadd.s32 4294967294, %s1794_s20  }
  0x15   : > { %2254 = sst [smem:[#allocation8_spill]] %s1778_s30  ;;  %s40_s2 = sadd.s32 1, %s1786_s19 }
  0x16   : > { %2255 = sst [smem:[#allocation9_spill]] %s1782_s0  ;;  %p41_p0 = scmp.ge.s32.totalorder %s40_s2, 2 }
  0x17   : > { %2256 = sst [smem:[#allocation10_spill]] %s1786_s19  ;;  %s43_s23 = sadd.s32 1, %s1790_s1 }
  0x18   : > { %2257 = sst [smem:[#allocation11_spill]] %s1790_s1  ;;  %p508_p1 = scmp.ne.s32.totalorder %s1774_s29, %s1770_s28 }
  0x19   : > { %2258 = sst [smem:[#allocation12_spill]] %s1794_s20  ;;  %p509_p2 = scmp.eq.s32.totalorder %s1489_s21, 3 }
  0x1a   : > { %s2309_s2 = smov (%p41_p0, %s40_s2), 0  ;;  %s2311_s23 = smov (!%p41_p0, %s43_s23), %s1790_s1 }
  0x1b   : > { %2259 = sst [smem:[#allocation13_spill]] %s2309_s2  ;;  %p1948_p3 = por %p509_p2, %p508_p1 }
  0x1c   : > { %p514_p4 = scmp.ne.s32.totalorder %s1770_s28, %s1766_s27  ;;  %p45_p5 = scmp.ge.s32.totalorder %s2311_s23, 2 }
  0x1d   : > { %s2260_s24 = scalar_select %p1948_p3, 1, 0 }
  0x1e   : > { %p515_p6 = scmp.eq.s32.totalorder %s1490_s22, 3  ;;  %p1493_p7 = scmp.ge.s32.totalorder %s1794_s20, 1 }
  0x1f   : > { %2261 = sst [smem:[#allocation14_spill]] %s2260_s24  ;;  %p638_p8 = scmp.lt.s32.totalorder %s1794_s20, 5 }
  0x20   : > { %s2313_s23 = smov (%p45_p5, %s2311_s23), 0  ;;  %p1958_p9 = por %p515_p6, %p514_p4 }
  0x21   : > { %2262 = sst [smem:[#allocation15_spill]] %s2313_s23  ;;  %p639_p10 = pnand %p1493_p7, %p638_p8 }
  0x22   : > { %s2263_s25 = scalar_select %p1958_p9, 1, 0 }
  0x23   : > { %s495_s26 = ssub.s32 %s1790_s1, %s2313_s23  ;;  %s498_s21 = sadd.s32 1, %s1774_s29 }
  0x24   : > { %2264 = sst [smem:[#allocation16_spill]] %s2263_s25  ;;  %p496_p11 = scmp.eq.s32.totalorder %s495_s26, 0 }
  0x25   : > { %642 = sbr.rel (%p639_p10) target bundleno = 2757 (0xac5), region = 92  ;;  %p737_p12 = scmp.lt.s32.totalorder (!%p639_p10), %s1782_s0, 1 }
  0x26   : > { %s1966_s2 = scalar_select %p496_p11, %s1774_s29, %s498_s21  }
  0x27   : > { %p744_p13 = scmp.lt.s32.totalorder (!%p639_p10), %s1778_s30, 1  ;;  %s2267_s27 = sld [smem:[#allocation18_spill]] (!%p639_p10) }
  0x28   : > { %2265 = sst [smem:[#allocation17_spill]] %s1966_s2  ;;  %s2274_s14 = sand.u32 (!%p639_p10), 1, %s1770_s28  }
  0x29   : > { %s2268_s4 = sld [smem:[#allocation22_spill]] (!%p639_p10)  ;;  %s2041_s15 = scalar_lea.vmem (!%p639_p10), [#allocation3], %s2274_s14 }
  0x2a   : > { %s1972_s19 = scalar_select %p737_p12, %s1782_s0, 1 }
  0x2b   : > { %s1975_s25 = scalar_select %p744_p13, %s1778_s30, 1 }
  0x2c   : > { %s1494_s26 = sshll.u32 %s1972_s19, 3  ;;  %s2269_s6 = sld [smem:[#allocation23_spill]] }
  0x2d   : > { %s740_s20 = scalar_lea.vmem %s2267_s27, %s1494_s26  ;;  %s1572_s24 = sshll.u32 %s1975_s25, 4 }
  0x2e   : > { %s2271_s10 = sld [smem:[#allocation25_spill]]  ;;  %s781_s29 = scalar_lea.vmem %s2219_s13, %s1975_s25 }
  0x2f   : > { %s1989_s17 = scalar_lea.vmem %s2268_s4, %s1572_s24  ;;  %s2272_s1 = sld [smem:[#allocation26_spill]] }
  0x30   : > { %s2275_s30 = sld [smem:[#allocation8_spill]] }
  0x32   : > { %s1998_s22 = scalar_lea.vmem %s2269_s6, %s1572_s24  ;;  %s1575_s6 = sshll.u32 %s1975_s25, 6 }
  0x33   : > { %s2029_s26 = scalar_lea.vmem %s2218_s12, %s1575_s6 }
  0x34   : > { %s2015_s16 = scalar_lea.vmem %s2271_s10, %s1572_s24  ;;  %s2273_s10 = sld [smem:[#allocation27_spill]] }
  0x35   : > { %s784_s4 = scalar_lea.vmem %s2272_s1, %s1975_s25 }
  0x36   : > { %p1503_p0 = scmp.ne.s32.totalorder %s2275_s30, 0 }
  0x37   : > { %s2276_s30 = sld [smem:[#allocation20_spill]] (!%p1503_p0) }
  0x38   : > { %792 = sbr.rel (%p1503_p0) target bundleno = 331 (0x14b), region = 96  ;;  %s2277_s23 = sld [smem:[#allocation21_spill]] (!%p1503_p0) }
  0x3a   : > { %s787_s9 = scalar_lea.vmem %s2273_s10, %s1975_s25 }
  0x3d   : > { %v793_v0 = vld [vmem:[%s740_s20] sm:$0xff]  ;;  %vm796_vm0 = vcmask 261120   ;;  %v1796_v2 = vmov 32.0  }
  0x3e   : > { %v797_v1 = vsel %vm796_vm0, %v793_v0, 0.0  ;;  %1671 = vrcp.f32 %v1796_v2  ;;  %v1669_v23 = vld [vmem:[%s2276_s30] ss:$0 sm:$0xff] }
  0x3f   : > { %798 = vadd.xlane.f32.xlu0 %v797_v1  ;;  %v1670_v25 = vld [vmem:[%s2277_s23] ss:$0 sm:$0xff] }
  0x44   : > { %v1672_v3 = vpop.eup %1671 }
  0x45   : > { %v801_v4 = vmul.f32 32.0, %v1672_v3  ;;  %vm805_vm1 = vweird.f32 %v1672_v3 }
  0x47   : > { %v802_v5 = vsub.f32 1.0, %v801_v4 }
  0x49   : > { %v803_v6 = vmul.f32 %v1672_v3, %v802_v5 }
  0x4b   : > { %v804_v7 = vadd.f32 %v1672_v3, %v803_v6 }
  0x4d   : > { %v806_v8 = vsel %vm805_vm1, %v1672_v3, %v804_v7 }
  0xb2   : > { %v799_v9 = vpop.xlane.xlu0 %798 }
  0xb3   : > { %v807_v10 = vmul.f32 %v806_v8, %v799_v9 }
  0xb5   : > { %v808_v11 = vsub.f32 %v793_v0, %v807_v10 }
  0xb7   : > { %v809_v12 = vmul.f32 %v808_v11, %v808_v11 }
  0xb9   : > { %v810_v13 = vsel %vm796_vm0, %v809_v12, 0.0 }
  0xba   : > { %811 = vadd.xlane.f32.xlu0 %v810_v13 }
 0x12d   : > { %v812_v14 = vpop.xlane.xlu0 %811 }
 0x12e   : > { %v813_v15 = vmul.f32 %v812_v14, %v806_v8 }
 0x130   : > { %v814_v16 = vadd.f32 1e-12, %v813_v15 }
 0x132   : > { %1673 = vrsqrt.f32 %v814_v16  ;;  %vm821_vm3 = vweird.f32 %v814_v16 }
 0x138   : > { %v1674_v17 = vpop.eup %1673 }
 0x139   : > { %v816_v18 = vmul.f32 %v1674_v17, %v814_v16  ;;  %vm822_vm2 = vweird.f32 %v1674_v17 }
 0x13a   : > { %vm823_vm4 = vmor %vm821_vm3, %vm822_vm2 }
 0x13b   : > { %v817_v19 = vmul.f32 %v1674_v17, %v816_v18 }
 0x13d   : > { %v818_v20 = vmul.f32 0.5, %v817_v19 }
 0x13f   : > { %v819_v21 = vsub.f32 1.5, %v818_v20 }
 0x141   : > { %v820_v22 = vmul.f32 %v1674_v17, %v819_v21 }
 0x143   : > { %v824_v24 = vsel %vm823_vm4, %v1674_v17, %v820_v22 }
 0x144   : > { %v825_v26 = vmul.f32 %v824_v24, %v808_v11 }
 0x146   : > { %v829_v27 = vmul.f32 %v1669_v23, %v825_v26 }
 0x148   : > { %v833_v28 = vadd.f32 %v1670_v25, %v829_v27 }
 0x14a   : > { %834 = vst.msk [vmem:[#allocation2] sm:$0xff] %vm796_vm0, %v833_v28 }
 0x14b PF: > { %v1577_v29 = vld [vmem:[%s1989_s17 + $0x8] sm:$0xff]  ;;  %v1576_v30 = vld [vmem:[%s1989_s17] sm:$0xff]  ;;  %vm858_vm5 = vcmask 261120   ;;  %s2278_s2 = scalar_lea.vmem %s2211_s5, %s1975_s25  ;;  %s1797_s17 = smov 80   ;;  %vm886_vm6 = vcmask 130048   ;;  %vm906_vm7 = vcmask 64512  }
 0x14c   : > { %868 = vmatpush.bf16.msra.mxu0 %v1577_v29  ;;  %v1675_v33 = vld [vmem:[%s2278_s2] ss:$0 sm:$0xff]  ;;  %s1798_s18 = smov 96   ;;  %s1799_s0 = smov 112   ;;  %vm924_vm8 = vcmask 1043456   ;;  %v1579_v18 = vld [vmem:[%s1998_s22 + $0x8] sm:$0xff] }
 0x14d   : > { %s2279_s14 = sld [smem:[#allocation19_spill]]  ;;  %s1800_s10 = smov 48   ;;  %v1578_v19 = vld [vmem:[%s1998_s22] sm:$0xff] }
 0x14e   : > { %s1801_s30 = smov 64   ;;  %s2281_s23 = scalar_lea.vmem %s2213_s7, %s1975_s25 }
 0x14f   : > { %v1677_v25 = vld [vmem:[%s2281_s23] ss:$0 sm:$0xff]  ;;  %s2282_s21 = scalar_lea.vmem %s2214_s8, %s1975_s25  ;;  %s2285_s3 = scalar_lea.vmem %s2217_s11, %s1975_s25 }
 0x150   : > { %869 = vmatpush.bf16.msra.mxu0 %v1576_v30  ;;  %s2288_s20 = sld [smem:[#allocation8_spill]] }
 0x151   : > { %v2055_v31 = vld [vmem:[#allocation2] sm:$0xff] }
 0x152   : > { %v837_v32 = vpack.c.bf16 %v2055_v31, %v2055_v31 }
 0x153   : > { %s2280_s6 = scalar_lea.vmem %s2279_s14, %s1972_s19  ;;  %s1802_s19 = smov 16  }
 0x154   : > { %1512 = vmatmul.msk.bf16.vlgmr.msra.gmra.mxu0 %vm858_vm5, %v837_v32  ;;  %v1676_v46 = vld [vmem:[%s2280_s6] ss:$0 sm:$0xff]  ;;  %v1803_v32 = vmov 32.0  }
 0x155   : > { %1035 = vmatpush.bf16.msrb.mxu0 %v1579_v18 }
 0x156   : > { %p1567_p1 = scmp.ge.s32.totalorder %s2288_s20, 1 }
 0x159   : > { %1036 = vmatpush.bf16.msrb.mxu0 %v1578_v19  ;;  %v1681_v19 = vld [vmem:[%s781_s29] ss:$0 sm:$0xff] }
 0x1d1   : > { %v871_v34 = vpop.f32.mrf.mxu0 }
 0x1d2   : > { %v872_v35 = vadd.f32 %v1675_v33, %v871_v34 }
 0x1d4   : > { %v875_v36 = vmul.f32 0.25, %v872_v35  ;;  %v877_v37 = vpack.c.bf16 %v872_v35, %v872_v35 }
 0x1d6   : > { %v882_v38 = vunpack.c.l.b16 %v877_v37  ;;  %v876_v39 = vpack.c.bf16 %v875_v36, %v875_v36 }
 0x1d8   : > { %v883_v40 = vpack.c.b16 %v882_v38, %v882_v38  ;;  %v942_v42 = vunpack.c.l.b16 %v876_v39 }
 0x1d9   : > { %v873_v41 = vpop.f32.mrf.mxu0 }
 0x1da   : > { %946 = vrot.lane.b32.xlu2 %v883_v40, %s1797_s17  ;;  %884 = vrot.lane.b32.xlu0 %v883_v40, %s1798_s18  ;;  %v943_v43 = vpack.c.b16 %v942_v42, %v942_v42  ;;  %s2283_s17 = sld [smem:[#allocation24_spill]] }
 0x1e0   : > { %s2284_s18 = scalar_lea.vmem %s2283_s17, %s1975_s25 }
 0x1e2   : > { %944 = vrot.lane.b32.xlu2 %v943_v43, %s1799_s0  ;;  %v1581_v43 = vld [vmem:[%s2015_s16 + $0x8] sm:$0xff] }
 0x234   : > { %v947_v58 = vpop.permute.xlu2 %946 }
 0x235   : > { %v952_v63 = vsel %vm886_vm6, %v947_v58, 0 }
 0x23c   : > { %v945_v2 = vpop.permute.xlu2 %944 }
 0x24c   : > { %v885_v44 = vpop.permute.xlu0 %884 }
 0x24d   : > { %v891_v45 = vsel %vm886_vm6, %v885_v44, 0  ;;  %v1580_v44 = vld [vmem:[%s2015_s16] sm:$0xff] }
 0x24e   : > { %900 = vmatpush.bf16.xpose.msra.mxu1 %v891_v45  ;;  %v1589_v45 = vld [vmem:[%s2029_s26 + $0x38] sm:$0xff] }
 0x24f   : > { %1197 = vmatpush.bf16.msra.mxu3 %v1589_v45 }
 0x255   : > { %1513 = vmatmul.msk.bf16.vlgmr.msra.gmra.mxu1 %vm886_vm6, %v876_v39 }
 0x256   : > { %1112 = vmatpush.bf16.msrb.mxu1 %v1581_v43 }
 0x25a   : > { %1113 = vmatpush.bf16.msrb.mxu1 %v1580_v44 }
 0x2d2   : > { %v902_v47 = vpop.f32.mrf.mxu1 }
 0x2d3   : > { %v903_v48 = vadd.f32 %v1676_v46, %v902_v47 }
 0x2d5   : > { %v907_v49 = vsel %vm906_vm7, %v903_v48, -inf }
 0x2d6   : > { %908 = vmax.xlane.f32.xlu0 %v907_v49 }
 0x2da   : > { %v904_v50 = vpop.f32.mrf.mxu1 }
 0x2ea   : > { %979 = vrot.lane.b32.xlu0 %v883_v40, %s1800_s10 }
 0x349   : > { %v909_v51 = vpop.xlane.xlu0 %908 }
 0x34a   : > { %v910_v52 = vsub.f32 %v903_v48, %v909_v51  ;;  %v1588_v48 = vld [vmem:[%s2029_s26 + $0x30] sm:$0xff] }
 0x34b   : > { %1198 = vmatpush.bf16.msra.mxu3 %v1588_v48 }
 0x34c   : > { %v911_v53 = vmul.f32 1.442695, %v910_v52 }
 0x34e   : > { %1684 = vpow2.f32 %v911_v53 }
 0x354   : > { %v1685_v54 = vpop.eup %1684 }
 0x355   : > { %v913_v55 = vsel %vm906_vm7, %v1685_v54, 0.0 }
 0x356   : > { %914 = vadd.xlane.f32.xlu1 %v913_v55 }
 0x35c   : > { %v980_v62 = vpop.permute.xlu0 %979 }
 0x35d   : > { %v985_v1 = vsel %vm924_vm8, %v980_v62, 0 }
 0x36f   : > { %919 = vrot.lane.b32.xlu1 %v883_v40, %s1801_s30 }
 0x3c9   : > { %v915_v56 = vpop.xlane.xlu1 %914 }
 0x3ca   : > { %1686 = vrcp.f32 %v915_v56  ;;  %v1678_v56 = vld [vmem:[%s2282_s21] ss:$0 sm:$0xff] }
 0x3d0   : > { %v1687_v57 = vpop.eup %1686 }
 0x3d1   : > { %v917_v59 = vmul.f32 %v1687_v57, %v1685_v54 }
 0x3d3   : > { %v918_v0 = vpack.c.bf16 %v917_v59, %v917_v59  ;;  %v1679_v59 = vld [vmem:[%s2284_s18] ss:$0 sm:$0xff] }
 0x3e1   : > { %v920_v60 = vpop.permute.xlu1 %919 }
 0x3e2   : > { %v926_v61 = vsel %vm924_vm8, %v920_v60, 0 }
 0x3e3   : > { %935 = vmatpush.bf16.msra.mxu2 %v926_v61 }
 0x3e6   : > { %1514 = vmatmul.msk.bf16.vlgmr.msra.gmra.mxu2 %vm906_vm7, %v918_v0  ;;  %v1586_v0 = vld [vmem:[%s2029_s26 + $0x20] sm:$0xff] }
 0x3e7   : > { %961 = vmatpush.bf16.xpose.msrb.mxu2 %v952_v63  ;;  %v1587_v63 = vld [vmem:[%s2029_s26 + $0x28] sm:$0xff] }
 0x3e8   : > { %1199 = vmatpush.bf16.msra.mxu3 %v1587_v63 }
 0x3ec   : > { %1200 = vmatpush.bf16.msra.mxu3 %v1586_v0 }
 0x3ef   : > { %994 = vmatpush.bf16.msra.mxu2 %v985_v1  ;;  %v1585_v1 = vld [vmem:[%s2029_s26 + $0x18] sm:$0xff] }
 0x3f0   : > { %1201 = vmatpush.bf16.msra.mxu3 %v1585_v1 }
 0x3f6   : > { %1515 = vmatmul.msk.bf16.vlgmr.msrb.gmra.mxu2 %vm886_vm6, %v945_v2  ;;  %v1584_v2 = vld [vmem:[%s2029_s26 + $0x10] sm:$0xff] }
 0x3f7   : > { %1202 = vmatpush.bf16.msra.mxu3 %v1584_v2 }
 0x469   : > { %v937_v3 = vpop.f32.mrf.mxu2 }
 0x471   : > { %v939_v4 = vpop.f32.mrf.mxu2 }
 0x472   : > { %v1582_v4 = vld [vmem:[%s2029_s26] sm:$0xff] }
 0x479   : > { %v963_v5 = vpop.f32.mrf.mxu2 }
 0x47a   : > { %v964_v6 = vadd.f32 %v1676_v46, %v963_v5  ;;  %v1680_v5 = vld [vmem:[%s2285_s3] ss:$0 sm:$0xff] }
 0x47c   : > { %v967_v7 = vsel %vm906_vm7, %v964_v6, -inf }
 0x47d   : > { %968 = vmax.xlane.f32.xlu2 %v967_v7 }
 0x481   : > { %v965_v8 = vpop.f32.mrf.mxu2 }
 0x4f0   : > { %v969_v9 = vpop.xlane.xlu2 %968 }
 0x4f1   : > { %v970_v10 = vsub.f32 %v964_v6, %v969_v9 }
 0x4f3   : > { %v971_v11 = vmul.f32 1.442695, %v970_v10 }
 0x4f5   : > { %1688 = vpow2.f32 %v971_v11 }
 0x4fb   : > { %v1689_v12 = vpop.eup %1688 }
 0x4fc   : > { %v973_v13 = vsel %vm906_vm7, %v1689_v12, 0.0 }
 0x4fd   : > { %974 = vadd.xlane.f32.xlu1 %v973_v13 }
 0x570   : > { %v975_v14 = vpop.xlane.xlu1 %974 }
 0x571   : > { %1690 = vrcp.f32 %v975_v14 }
 0x572   : > { %1692 = vrcp.f32 %v1803_v32 }
 0x577   : > { %v1691_v15 = vpop.eup %1690 }
 0x578   : > { %v977_v16 = vmul.f32 %v1691_v15, %v1689_v12  ;;  %v1693_v33 = vpop.eup %1692 }
 0x579   : > { %v1049_v34 = vmul.f32 32.0, %v1693_v33  ;;  %vm1053_vm9 = vweird.f32 %v1693_v33 }
 0x57a   : > { %v978_v17 = vpack.c.bf16 %v977_v16, %v977_v16 }
 0x57b   : > { %v1050_v35 = vsub.f32 1.0, %v1049_v34 }
 0x57c   : > { %1516 = vmatmul.msk.bf16.vlgmr.msra.gmra.mxu2 %vm906_vm7, %v978_v17 }
 0x57d   : > { %v1051_v36 = vmul.f32 %v1693_v33, %v1050_v35 }
 0x57f   : > { %v1052_v37 = vadd.f32 %v1693_v33, %v1051_v36 }
 0x581   : > { %v2091_v38 = vsel %vm1053_vm9, %v1693_v33, %v1052_v37 }
 0x5ff   : > { %v996_v20 = vpop.f32.mrf.mxu2 }
 0x600   : > { %1001 = vrot.lane.b32.xlu2 %v996_v20, %s1802_s19 }
 0x607   : > { %v998_v21 = vpop.f32.mrf.mxu2 }
 0x65a   : > { %v1002_v22 = vpop.permute.xlu2 %1001 }
 0x65b   : > { %v1004_v23 = vsel %vm886_vm6, %v937_v3, %v1002_v22  ;;  %v1583_v3 = vld [vmem:[%s2029_s26 + $0x8] sm:$0xff] }
 0x65c   : > { %v1005_v24 = vpack.c.bf16 %v1004_v23, %v1004_v23  ;;  %1203 = vmatpush.bf16.msra.mxu3 %v1583_v3 }
 0x65e   : > { %1525 = vmatmul.msk.bf16.vlgmr.msrb.gmra.mxu0 %vm858_vm5, %v1005_v24 }
 0x660   : > { %1204 = vmatpush.bf16.msra.mxu3 %v1582_v4 }
 0x6db   : > { %v1038_v26 = vpop.f32.mrf.mxu0 }
 0x6dc   : > { %v1039_v27 = vadd.f32 %v1677_v25, %v1038_v26 }
 0x6de   : > { %v1042_v28 = vadd.f32 %v1039_v27, %v2055_v31 }
 0x6e0   : > { %v1045_v29 = vsel %vm858_vm5, %v1042_v28, 0.0 }
 0x6e1   : > { %1046 = vadd.xlane.f32.xlu0 %v1045_v29 }
 0x6e3   : > { %v1040_v30 = vpop.f32.mrf.mxu0 }
 0x754   : > { %v1047_v39 = vpop.xlane.xlu0 %1046 }
 0x755   : > { %v1055_v31 = vmul.f32 %v2091_v38, %v1047_v39 }
 0x757   : > { %v1056_v40 = vsub.f32 %v1042_v28, %v1055_v31 }
 0x759   : > { %v1057_v41 = vmul.f32 %v1056_v40, %v1056_v40 }
 0x75b   : > { %v1058_v42 = vsel %vm858_vm5, %v1057_v41, 0.0 }
 0x75c   : > { %1059 = vadd.xlane.f32.xlu1 %v1058_v42 }
 0x7cf   : > { %v1060_v46 = vpop.xlane.xlu1 %1059 }
 0x7d0   : > { %v1061_v47 = vmul.f32 %v1060_v46, %v2091_v38 }
 0x7d2   : > { %v1062_v49 = vadd.f32 1e-12, %v1061_v47 }
 0x7d4   : > { %1694 = vrsqrt.f32 %v1062_v49  ;;  %vm1069_vm11 = vweird.f32 %v1062_v49 }
 0x7da   : > { %v1695_v50 = vpop.eup %1694 }
 0x7db   : > { %v1064_v51 = vmul.f32 %v1695_v50, %v1062_v49  ;;  %vm1070_vm10 = vweird.f32 %v1695_v50 }
 0x7dc   : > { %vm1071_vm12 = vmor %vm1069_vm11, %vm1070_vm10 }
 0x7dd   : > { %v1065_v52 = vmul.f32 %v1695_v50, %v1064_v51 }
 0x7df   : > { %v1066_v53 = vmul.f32 0.5, %v1065_v52 }
 0x7e1   : > { %v1067_v54 = vsub.f32 1.5, %v1066_v53 }
 0x7e3   : > { %v1068_v55 = vmul.f32 %v1695_v50, %v1067_v54 }
 0x7e5   : > { %v1072_v57 = vsel %vm1071_vm12, %v1695_v50, %v1068_v55 }
 0x7e6   : > { %v1073_v58 = vmul.f32 %v1072_v57, %v1056_v40  ;;  %v1682_v40 = vld [vmem:[%s784_s4] ss:$0 sm:$0xff] }
 0x7e8   : > { %v1077_v60 = vmul.f32 %v1678_v56, %v1073_v58 }
 0x7ea   : > { %v1081_v61 = vadd.f32 %v1679_v59, %v1077_v60 }
 0x7ec   : > { %v1082_v62 = vpack.c.bf16 %v1081_v61, %v1081_v61 }
 0x7ee   : > { %1534 = vmatmul.msk.bf16.vlgmr.msrb.gmra.mxu1 %vm858_vm5, %v1082_v62 }
 0x86b   : > { %v1115_v6 = vpop.f32.mrf.mxu1 }
 0x86c   : > { %v1116_v7 = vadd.f32 %v1680_v5, %v1115_v6 }
 0x86e   : > { %v1120_v8 = vmul.f32 0.044715, %v1116_v7  ;;  %v1119_v15 = vmul.f32 0.5, %v1116_v7 }
 0x870   : > { %v1121_v9 = vmul.f32 %v1120_v8, %v1116_v7 }
 0x872   : > { %v1122_v10 = vmul.f32 %v1121_v9, %v1116_v7 }
 0x873   : > { %v1117_v11 = vpop.f32.mrf.mxu1 }
 0x874   : > { %v1123_v12 = vadd.f32 %v1122_v10, %v1116_v7 }
 0x876   : > { %v1124_v13 = vmul.f32 0.7978846, %v1123_v12 }
 0x878   : > { %1696 = vtanh.f32 %v1124_v13 }
 0x87e   : > { %v1697_v14 = vpop.eup %1696 }
 0x87f   : > { %v1126_v16 = vadd.f32 1.0, %v1697_v14 }
 0x881   : > { %v1127_v17 = vmul.f32 %v1126_v16, %v1119_v15 }
 0x883   : > { %v1128_v18 = vpack.c.bf16 %v1127_v17, %v1127_v17 }
 0x885   : > { %1205 = vmatmul.bf16.vlgmr.msra.gmra.mxu3 %v1128_v18 }
 0x908   : > { %v1206_v20 = vpop.f32.mrf.mxu3 }
 0x909   : > { %v1207_v21 = vadd.f32 %v1681_v19, %v1206_v20 }
 0x90b   : > { %v1210_v22 = vadd.f32 %v1207_v21, %v1081_v61 }
 0x90d   : > { %v1213_v23 = vsel %vm858_vm5, %v1210_v22, 0.0 }
 0x90e   : > { %1214 = vadd.xlane.f32.xlu2 %v1213_v23 }
 0x910   : > { %v1208_v24 = vpop.f32.mrf.mxu3 }
 0x981   : > { %v1215_v25 = vpop.xlane.xlu2 %1214 }
 0x982   : > { %v1216_v26 = vmul.f32 %v1215_v25, %v2091_v38 }
 0x984   : > { %v1217_v27 = vsub.f32 %v1210_v22, %v1216_v26 }
 0x986   : > { %v1218_v28 = vmul.f32 %v1217_v27, %v1217_v27 }
 0x988   : > { %v1219_v29 = vsel %vm858_vm5, %v1218_v28, 0.0 }
 0x989   : > { %1220 = vadd.xlane.f32.xlu1 %v1219_v29 }
 0x9fc   : > { %v1221_v30 = vpop.xlane.xlu1 %1220 }
 0x9fd   : > { %v1222_v32 = vmul.f32 %v1221_v30, %v2091_v38  ;;  %v1683_v38 = vld [vmem:[%s787_s9] ss:$0 sm:$0xff] }
 0x9ff   : > { %v1223_v33 = vadd.f32 1e-12, %v1222_v32 }
 0xa01   : > { %1698 = vrsqrt.f32 %v1223_v33  ;;  %vm1230_vm14 = vweird.f32 %v1223_v33 }
 0xa07   : > { %v1699_v34 = vpop.eup %1698 }
 0xa08   : > { %v1225_v35 = vmul.f32 %v1699_v34, %v1223_v33  ;;  %vm1231_vm13 = vweird.f32 %v1699_v34 }
 0xa09   : > { %vm1232_vm15 = vmor %vm1230_vm14, %vm1231_vm13 }
 0xa0a   : > { %v1226_v36 = vmul.f32 %v1699_v34, %v1225_v35 }
 0xa0c   : > { %v1227_v37 = vmul.f32 0.5, %v1226_v36 }
 0xa0e   : > { %v1228_v39 = vsub.f32 1.5, %v1227_v37 }
 0xa10   : > { %v1229_v31 = vmul.f32 %v1699_v34, %v1228_v39 }
 0xa12   : > { %v1233_v41 = vsel %vm1232_vm15, %v1699_v34, %v1229_v31 }
 0xa13   : > { %v1234_v42 = vmul.f32 %v1233_v41, %v1217_v27  ;;  %1246 = sbr.rel (%p1567_p1) target bundleno = 2586 (0xa1a), region = 100 }
 0xa15   : > { %v1238_v43 = vmul.f32 %v1682_v40, %v1234_v42 }
 0xa17   : > { %v1242_v44 = vadd.f32 %v1683_v38, %v1238_v43 }
 0xa19   : > { %1247 = vst.msk [vmem:[#allocation2] sm:$0xff] %vm858_vm5, %v1242_v44 }
 0xa1a PF: > { %s2289_s23 = sld [smem:[#allocation8_spill]] }
 0xa20   : > { %p1568_p2 = scmp.ne.s32.totalorder %s2289_s23, 1 }
 0xa21   : > { %s2290_s16 = sld [smem:[#allocation28_spill]] (!%p1568_p2) }
 0xa22   : > { %1251 = sbr.rel (%p1568_p2) target bundleno = 2736 (0xab0), region = 104  ;;  %s2291_s24 = sld [smem:[#allocation29_spill]] (!%p1568_p2) }
 0xa27   : > { %v1255_v45 = vld [vmem:[%s2290_s16 + $0x18] sm:$0xff]  ;;  %v1254_v46 = vld [vmem:[%s2290_s16 + $0x10] sm:$0xff]  ;;  %v1253_v47 = vld [vmem:[%s2290_s16 + $0x8] sm:$0xff] }
 0xa28   : > { %1272 = vmatpush.msra.mxu0 %v1255_v45  ;;  %v1252_v48 = vld [vmem:[%s2290_s16] sm:$0xff] }
 0xa29   : > { %v1256_v49 = vld [vmem:[%s2291_s24] sm:$0x1] }
 0xa2a   : > { %1273 = vmatpush.msra.mxu0 %v1254_v46 }
 0xa2c   : > { %1274 = vmatpush.msra.mxu0 %v1253_v47 }
 0xa2e   : > { %1275 = vmatpush.msra.mxu0 %v1252_v48 }
 0xa2f   : > { %1569 = vmatmul.msk.f32.vlgmr.msra.gmra.mxu0 %vm858_vm5, %v1242_v44 }
 0xaac   : > { %v1277_v50 = vpop.f32.mrf.mxu0 }
 0xaad   : > { %v1278_v51 = vadd.f32 %v1277_v50, %v1256_v49 }
 0xaaf   : > { %1280 = vst [vmem:[%s2041_s15] sm:$0x1] %v1278_v51 }
 0xab0 PF: > { %s2292_s3 = sld [smem:[#allocation9_spill]]  ;;  %s1292_s19 = sshll.u32 %s2041_s15, 4  ;;  %s1293_s19 = int_to_ptr.vmem [resolvable:$true] %s1292_s19 }
 0xab1   : > { %s2293_s29 = sld [smem:[#allocation30_spill]]  ;;  %s2296_s20 = sand.u32 1, %s1770_s28  }
 0xab2   : > { %s1282_s23 = scalar_lea.sflag [#allocation4], %s2296_s20 }
 0xab7   : > { %s2294_s6 = smov %s2293_s29  ;;  %s1290_s30 = scalar_lea.hbm %s2293_s29, %s2292_s3 }
 0xab8   : > { %s1294_s1 = sshll.u32 %s1290_s30, 4  ;;  %s1720_s9 = scalar_lea.hbm %s2294_s6, 2  ;;  %s1295_s1 = int_to_ptr.hbm [resolvable:$true] %s1294_s1 }
 0xab9   : > { %s1714_s4 = sshra.s32 %s1295_s1, 4  ;;  %s1715_s4 = int_to_ptr.hbm [resolvable:$true] %s1714_s4 }
 0xaba   : > { %s1716_s22 = scalar_lea.hbm %s1715_s4, 1  ;;  %p1721_p7 = scmp.lt.s32.totalorder %s1715_s4, %s2294_s6 }
 0xabb   : > { %p1717_p4 = scmp.ne.s32.totalorder %s1715_s4, %s1716_s22  ;;  %p1722_p8 = scmp.lt.s32.totalorder %s1720_s9, %s1716_s22 }
 0xabd   : > { %p1718_p5 = pnand %p1717_p4, %p1948_p3  ;;  %p1723_p10 = por %p1722_p8, %p1721_p7 }
 0xabf   : > { %p1719_p6 = pneg %p1718_p5 }
 0xac1   : > { %p1724_p11 = pnand %p1723_p10, %p1719_p6 }
 0xac3   : > { %1727 = shalt.err (!%p1724_p11)
}
 0xac4   : > { %1590 = dma.vmem_to_hbm [thread:$0]  (%p1948_p3), %s1293_s19, 16, %s1295_s1, %s1282_s23  }
 0xac5 PF: > { %s2297_s15 = sld [smem:[#allocation12_spill]] }
 0xac6   : > { %s2298_s17 = sld [smem:[#allocation6_spill]] }
 0xacb   : > { %p1596_p12 = scmp.ge.s32.totalorder %s2297_s15, 2 }
 0xacc   : > { %s1306_s0 = sand.u32 1, %s2298_s17  }
 0xacd   : > { %p1593_p13 = pnand %p1596_p12, %p1958_p9  ;;  %s1307_s24 = scalar_lea.sflag [#allocation4], %s1306_s0 }
 0xacf   : > { %p1594_p0 = pneg %p1593_p13 }
 0xad1   : > { %1761 = dma.done.wait (%p1594_p0), %s1307_s24, 16  }
 0xad2   : > { %1763 = vsyncadd (%p1594_p0), %s1307_s24, 4294967280  ;;  %s31_s20 = sadd.s32 1, %s2297_s15   ;;  %s2300_s3 = sld [smem:[#allocation7_spill]] }
 0xad3   : > { %p28_p1 = scmp.ge.s32.totalorder %s31_s20, 6   ;;  %s2301_s29 = sld [smem:[#allocation17_spill]] }
 0xad4   : > { %s2302_s30 = sld [smem:[#allocation10_spill]]  ;;  %s2306_s27 = smov %s1770_s28 }
 0xad5   : > { %s2303_s0 = sld [smem:[#allocation11_spill]]  ;;  %30 = sbr.rel (!%p28_p1) target bundleno = 19 (0x13), region = 178 }
 0xad6   : > { %s2304_s19 = sld [smem:[#allocation13_spill]] }
 0xad7   : > { %s2305_s1 = sld [smem:[#allocation15_spill]] }
 0xad8   : > { %s2307_s28 = smov %s2300_s3 }
 0xada   :  { %1312 = vsyncpa [#allocation4], 1 }
 0xadb   :  { %1314 = vsyncpa [#allocation4 + $0x1], 1 }

</bundles_post_ra>
